<compile_context>
chip_gen: v7x
topology: tpu7x:2x2x1
jax: 0.10.0
libtpu: 0.0.40
codegen_flags: <defaults>
</compile_context>

<pallas_src>
import functools

import jax
import jax.numpy as jnp
from jax.experimental import pallas as pl
from jax.experimental.pallas import tpu as pltpu

_EPS = 1e-5
_MAX_LANES = 2048                 # lane tile cap (multiple of 128)
_TILE_BYTES = 4 * 1024 * 1024     # target x-tile footprint per grid step
_VMEM_LIMIT = 32 * 1024 * 1024    # safe on v5e (16 MiB default) and v7x (64 MiB phys)


def _stats_kernel(x_ref, gamma_ref, beta_ref, scale_ref, bias_ref,
                  sum_acc, sq_acc, *,
                  inv_m, hw, c, tm, tc, strips, sw, mask_lanes, mask_rows):
    # x_ref: (tc, tm) channels on sublanes, spatial on lanes.
    ci = pl.program_id(0)
    ni = pl.program_id(1)
    mi = pl.program_id(2)

    @pl.when((ni == 0) & (mi == 0))
    def _():
        sum_acc[...] = jnp.zeros_like(sum_acc)
        sq_acc[...] = jnp.zeros_like(sq_acc)

    # Masks for padded regions of partial blocks (statically elided when the
    # tile sizes divide the array dims).
    row_ok = None
    if mask_rows:
        row_idx = jax.lax.broadcasted_iota(jnp.int32, (tc, sw), 0)
        row_ok = row_idx < (c - ci * tc)
    lane_idx = None
    if mask_lanes:
        lane_idx = jax.lax.broadcasted_iota(jnp.int32, (tc, sw), 1)
    col0 = mi * tm

    # Lane-strip accumulation: pure VPU adds into (tc, sw) scratch; the
    # cross-lane reduce happens only once per channel block in the epilogue.
    for s in range(strips):                      # static unroll (<= 16)
        xs = x_ref[:, s * sw:(s + 1) * sw].astype(jnp.float32)
        ok = None
        if mask_lanes:
            ok = (lane_idx + (col0 + s * sw)) < hw
        if mask_rows:
            ok = row_ok if ok is None else (ok & row_ok)
        if ok is not None:
            xs = jnp.where(ok, xs, 0.0)
        sum_acc[...] += xs
        sq_acc[...] += xs * xs

    is_last = (ni == pl.num_programs(1) - 1) & (mi == pl.num_programs(2) - 1)

    @pl.when(is_last)
    def _():
        mean = jnp.sum(sum_acc[...], axis=-1, keepdims=True) * inv_m
        ex2 = jnp.sum(sq_acc[...], axis=-1, keepdims=True) * inv_m
        # One-pass (biased) variance; clamp so cancellation can never feed a
        # negative value into rsqrt.
        var = jnp.maximum(ex2 - mean * mean, 0.0)
        inv_std = jax.lax.rsqrt(var + _EPS)
        scale = gamma_ref[...].astype(jnp.float32) * inv_std
        scale_ref[...] = scale
        bias_ref[...] = beta_ref[...].astype(jnp.float32) - mean * scale


def _apply_kernel(x_ref, scale_ref, bias_ref, o_ref, *, tc):
    # x_ref/o_ref: (tc, tm); scale_ref/bias_ref: (c_pad, 1) resident in VMEM.
    ci = pl.program_id(1)
    off = pl.multiple_of(ci * tc, tc)
    sc = scale_ref[pl.ds(off, tc), :]
    b = bias_ref[pl.ds(off, tc), :]
    x = x_ref[...].astype(jnp.float32)
    o_ref[...] = jnp.maximum(x * sc + b, 0.0).astype(o_ref.dtype)


def norm_act(x_nchw, gamma, beta):
    """BatchNorm2d (batch stats, training mode) + ReLU.  x: (N, C, H, W)."""
    n, c, h, w = x_nchw.shape
    hw = h * w
    inv_m = 1.0 / float(n * hw)

    x3 = x_nchw.reshape(n, c, hw)                      # free reshape, NCHW-native
    gamma_c1 = gamma.reshape(c, 1).astype(jnp.float32)
    beta_c1 = beta.reshape(c, 1).astype(jnp.float32)

    # ---- Tiling --------------------------------------------------------------
    # Lanes (spatial): full extent if it fits, else lane-dense 128-multiples
    # with cdiv grid + masking for the ragged tail.
    tm = hw if hw <= _MAX_LANES else _MAX_LANES
    grid_m = pl.cdiv(hw, tm)
    mask_lanes = (hw % tm) != 0

    # Sublanes (channels): dtype-aware tile budget.
    itemsize = jnp.dtype(x_nchw.dtype).itemsize
    budget_c = max(8, _TILE_BYTES // (tm * itemsize))
    tc_a = c if c <= budget_c else max(8, (budget_c // 8) * 8)
    grid_c_a = pl.cdiv(c, tc_a)
    c_pad = grid_c_a * tc_a        # scale/bias padded so pass-2 ds slices stay in-bounds

    # Pass-1 channel tile: split so the stats pass has >= 2 parallel channel
    # blocks when possible (keeps both v7x TensorCores busy).
    tc_s = tc_a
    if c > 8 and pl.cdiv(c, tc_s) < 2:
        tc_s = max(8, ((c // 2) // 8) * 8)
    grid_c_s = pl.cdiv(c, tc_s)
    mask_rows = (c % tc_s) != 0

    if tm % 128 == 0:
        strips, sw = tm // 128, 128
    else:                           # hw < 128: one narrow strip
        strips, sw = 1, tm

    # ---- Pass 1: per-channel sum / sumsq -> folded per-channel scale & bias --
    scale_c1, bias_c1 = pl.pallas_call(
        functools.partial(
            _stats_kernel, inv_m=inv_m, hw=hw, c=c, tm=tm, tc=tc_s,
            strips=strips, sw=sw, mask_lanes=mask_lanes, mask_rows=mask_rows),
        out_shape=(jax.ShapeDtypeStruct((c_pad, 1), jnp.float32),
                   jax.ShapeDtypeStruct((c_pad, 1), jnp.float32)),
        grid=(grid_c_s, n, grid_m),
        in_specs=[
            pl.BlockSpec((None, tc_s, tm), lambda ci, ni, mi: (ni, ci, mi)),
            pl.BlockSpec((tc_s, 1), lambda ci, ni, mi: (ci, 0)),
            pl.BlockSpec((tc_s, 1), lambda ci, ni, mi: (ci, 0)),
        ],
        out_specs=(
            pl.BlockSpec((tc_s, 1), lambda ci, ni, mi: (ci, 0)),
            pl.BlockSpec((tc_s, 1), lambda ci, ni, mi: (ci, 0)),
        ),
        scratch_shapes=[pltpu.VMEM((tc_s, sw), jnp.float32),
                        pltpu.VMEM((tc_s, sw), jnp.float32)],
        compiler_params=pltpu.CompilerParams(
            dimension_semantics=("parallel", "arbitrary", "arbitrary"),
            vmem_limit_bytes=_VMEM_LIMIT),
    )(x3, gamma_c1, beta_c1)

    # ---- Pass 2: y = max(x * scale + bias, 0), NCHW-native streaming ---------
    out3 = pl.pallas_call(
        functools.partial(_apply_kernel, tc=tc_a),
        out_shape=jax.ShapeDtypeStruct((n, c, hw), x_nchw.dtype),
        grid=(n, grid_c_a, grid_m),
        in_specs=[
            pl.BlockSpec((None, tc_a, tm), lambda ni, ci, mi: (ni, ci, mi)),
            pl.BlockSpec((c_pad, 1), lambda ni, ci, mi: (0, 0)),   # resident, 1 DMA
            pl.BlockSpec((c_pad, 1), lambda ni, ci, mi: (0, 0)),   # resident, 1 DMA
        ],
        out_specs=pl.BlockSpec((None, tc_a, tm), lambda ni, ci, mi: (ni, ci, mi)),
        compiler_params=pltpu.CompilerParams(
            dimension_semantics=("parallel", "parallel", "parallel"),
            vmem_limit_bytes=_VMEM_LIMIT),
    )(x3, scale_c1, bias_c1)

    return out3.reshape(n, c, h, w)


if __name__ == "__main__":
    key = jax.random.PRNGKey(0)
    N, C, H, W = 2, 4, 16, 16
    x = jax.random.normal(key, (N, C, H, W), dtype=jnp.float32)
    # PyTorch default is gamma=1, beta=0; perturb deterministically to exercise
    # the affine broadcast.
    gamma = 1.0 + 0.1 * jnp.arange(C, dtype=jnp.float32)
    beta = 0.05 * jnp.arange(C, dtype=jnp.float32)

    out = jax.block_until_ready(norm_act(x, gamma, beta))

    # Pure-JAX reference (same training-mode BatchNorm2d + ReLU semantics).
    mean = jnp.mean(x, axis=(0, 2, 3), keepdims=True)
    var = jnp.mean((x - mean) ** 2, axis=(0, 2, 3), keepdims=True)
    ref = jnp.maximum(
        (x - mean) / jnp.sqrt(var + _EPS) * gamma.reshape(1, -1, 1, 1)
        + beta.reshape(1, -1, 1, 1),
        0.0,
    )

    assert out.shape == (N, C, H, W)
    # Kernel uses one-pass E[x^2]-mean^2 variance with f32 accumulation;
    # tolerance reflects the slightly different summation order.
    assert jnp.allclose(out, ref, atol=1e-4, rtol=1e-4), "mismatch vs reference"
    print("KERNEL_OK")
</pallas_src>

<mosaic_0001>
module attributes {stable_mosaic.version = 11 : i64} {
  func.func @_stats_kernel(%arg0: i32, %arg1: i32, %arg2: i32, %arg3: memref<1x4x256xf32, #tpu.memory_space<vmem>>, %arg4: memref<4x1xf32, #tpu.memory_space<vmem>>, %arg5: memref<4x1xf32, #tpu.memory_space<vmem>>, %arg6: memref<4x1xf32, #tpu.memory_space<vmem>>, %arg7: memref<4x1xf32, #tpu.memory_space<vmem>>, %arg8: memref<4x128xf32, #tpu.memory_space<vmem>>, %arg9: memref<4x128xf32, #tpu.memory_space<vmem>>) attributes {dimension_semantics = [#tpu.dimension_semantics<parallel>, #tpu.dimension_semantics<arbitrary>, #tpu.dimension_semantics<arbitrary>], iteration_bounds = array<i64: 1, 2, 1>, scalar_prefetch = 0 : i64, scratch_operands = 2 : i64, tpu.core_type = #tpu.core_type<tc>, window_params = [{transform_indices = @transform_0, window_bounds = array<i64: 1, 4, 256>}, {transform_indices = @transform_1, window_bounds = array<i64: 4, 1>}, {transform_indices = @transform_2, window_bounds = array<i64: 4, 1>}, {transform_indices = @transform_3, window_bounds = array<i64: 4, 1>}, {transform_indices = @transform_4, window_bounds = array<i64: 4, 1>}]} {
    %c0_i32 = arith.constant 0 : i32
    %0 = arith.cmpi eq, %arg1, %c0_i32 : i32
    %c0_i32_0 = arith.constant 0 : i32
    %1 = arith.cmpi eq, %arg2, %c0_i32_0 : i32
    %2 = arith.andi %0, %1 : i1
    %3 = arith.extui %2 : i1 to i32
    %c0_i32_1 = arith.constant 0 : i32
    %4 = arith.cmpi ne, %3, %c0_i32_1 : i32
    scf.if %4 {
      %cst = arith.constant 0.000000e+00 : f32
      %28 = vector.broadcast %cst : f32 to vector<4x128xf32>
      %c0_24 = arith.constant 0 : index
      %c0_25 = arith.constant 0 : index
      %29 = vector.load %arg8[%c0_24, %c0_25] : memref<4x128xf32, #tpu.memory_space<vmem>>, vector<4x128xf32>
      tpu.vector_store %arg8[%c0_24, %c0_25], %28 {strides = array<i32>} : memref<4x128xf32, #tpu.memory_space<vmem>>, vector<4x128xf32>,
      %cst_26 = arith.constant 0.000000e+00 : f32
      %30 = vector.broadcast %cst_26 : f32 to vector<4x128xf32>
      %c0_27 = arith.constant 0 : index
      %c0_28 = arith.constant 0 : index
      %31 = vector.load %arg9[%c0_27, %c0_28] : memref<4x128xf32, #tpu.memory_space<vmem>>, vector<4x128xf32>
      tpu.vector_store %arg9[%c0_27, %c0_28], %30 {strides = array<i32>} : memref<4x128xf32, #tpu.memory_space<vmem>>, vector<4x128xf32>,
    } else {
    }
    %c0 = arith.constant 0 : index
    %c0_2 = arith.constant 0 : index
    %c0_3 = arith.constant 0 : index
    %5 = vector.load %arg3[%c0, %c0_2, %c0_3] : memref<1x4x256xf32, #tpu.memory_space<vmem>>, vector<1x4x128xf32>
    %6 = vector.shape_cast %5 : vector<1x4x128xf32> to vector<4x128xf32>
    %c0_4 = arith.constant 0 : index
    %c0_5 = arith.constant 0 : index
    %7 = vector.load %arg8[%c0_4, %c0_5] : memref<4x128xf32, #tpu.memory_space<vmem>>, vector<4x128xf32>
    %8 = arith.addf %7, %6 : vector<4x128xf32>
    %c0_6 = arith.constant 0 : index
    %c0_7 = arith.constant 0 : index
    %9 = vector.load %arg8[%c0_6, %c0_7] : memref<4x128xf32, #tpu.memory_space<vmem>>, vector<4x128xf32>
    tpu.vector_store %arg8[%c0_6, %c0_7], %8 {strides = array<i32>} : memref<4x128xf32, #tpu.memory_space<vmem>>, vector<4x128xf32>,
    %c0_8 = arith.constant 0 : index
    %c0_9 = arith.constant 0 : index
    %10 = vector.load %arg9[%c0_8, %c0_9] : memref<4x128xf32, #tpu.memory_space<vmem>>, vector<4x128xf32>
    %11 = arith.mulf %6, %6 : vector<4x128xf32>
    %12 = arith.addf %10, %11 : vector<4x128xf32>
    %c0_10 = arith.constant 0 : index
    %c0_11 = arith.constant 0 : index
    %13 = vector.load %arg9[%c0_10, %c0_11] : memref<4x128xf32, #tpu.memory_space<vmem>>, vector<4x128xf32>
    tpu.vector_store %arg9[%c0_10, %c0_11], %12 {strides = array<i32>} : memref<4x128xf32, #tpu.memory_space<vmem>>, vector<4x128xf32>,
    %c0_12 = arith.constant 0 : index
    %c0_13 = arith.constant 0 : index
    %c128 = arith.constant 128 : index
    %14 = vector.load %arg3[%c0_12, %c0_13, %c128] : memref<1x4x256xf32, #tpu.memory_space<vmem>>, vector<1x4x128xf32>
    %15 = vector.shape_cast %14 : vector<1x4x128xf32> to vector<4x128xf32>
    %c0_14 = arith.constant 0 : index
    %c0_15 = arith.constant 0 : index
    %16 = vector.load %arg8[%c0_14, %c0_15] : memref<4x128xf32, #tpu.memory_space<vmem>>, vector<4x128xf32>
    %17 = arith.addf %16, %15 : vector<4x128xf32>
    %c0_16 = arith.constant 0 : index
    %c0_17 = arith.constant 0 : index
    %18 = vector.load %arg8[%c0_16, %c0_17] : memref<4x128xf32, #tpu.memory_space<vmem>>, vector<4x128xf32>
    tpu.vector_store %arg8[%c0_16, %c0_17], %17 {strides = array<i32>} : memref<4x128xf32, #tpu.memory_space<vmem>>, vector<4x128xf32>,
    %c0_18 = arith.constant 0 : index
    %c0_19 = arith.constant 0 : index
    %19 = vector.load %arg9[%c0_18, %c0_19] : memref<4x128xf32, #tpu.memory_space<vmem>>, vector<4x128xf32>
    %20 = arith.mulf %15, %15 : vector<4x128xf32>
    %21 = arith.addf %19, %20 : vector<4x128xf32>
    %c0_20 = arith.constant 0 : index
    %c0_21 = arith.constant 0 : index
    %22 = vector.load %arg9[%c0_20, %c0_21] : memref<4x128xf32, #tpu.memory_space<vmem>>, vector<4x128xf32>
    tpu.vector_store %arg9[%c0_20, %c0_21], %21 {strides = array<i32>} : memref<4x128xf32, #tpu.memory_space<vmem>>, vector<4x128xf32>,
    %c1_i32 = arith.constant 1 : i32
    %23 = arith.cmpi eq, %arg1, %c1_i32 : i32
    %c0_i32_22 = arith.constant 0 : i32
    %24 = arith.cmpi eq, %arg2, %c0_i32_22 : i32
    %25 = arith.andi %23, %24 : i1
    %26 = arith.extui %25 : i1 to i32
    %c0_i32_23 = arith.constant 0 : i32
    %27 = arith.cmpi ne, %26, %c0_i32_23 : i32
    scf.if %27 {
      %c0_24 = arith.constant 0 : index
      %c0_25 = arith.constant 0 : index
      %28 = vector.load %arg8[%c0_24, %c0_25] : memref<4x128xf32, #tpu.memory_space<vmem>>, vector<4x128xf32>
      %cst = arith.constant dense<0.000000e+00> : vector<4xf32>
      %29 = vector.multi_reduction <add>, %28, %cst [1] : vector<4x128xf32> to vector<4xf32>
      %30 = vector.shape_cast %29 : vector<4xf32> to vector<4x1xf32>
      %cst_26 = arith.constant 0.001953125 : f32
      %31 = vector.broadcast %cst_26 : f32 to vector<4x1xf32>
      %32 = arith.mulf %30, %31 : vector<4x1xf32>
      %c0_27 = arith.constant 0 : index
      %c0_28 = arith.constant 0 : index
      %33 = vector.load %arg9[%c0_27, %c0_28] : memref<4x128xf32, #tpu.memory_space<vmem>>, vector<4x128xf32>
      %cst_29 = arith.constant dense<0.000000e+00> : vector<4xf32>
      %34 = vector.multi_reduction <add>, %33, %cst_29 [1] : vector<4x128xf32> to vector<4xf32>
      %35 = vector.shape_cast %34 : vector<4xf32> to vector<4x1xf32>
      %cst_30 = arith.constant 0.001953125 : f32
      %36 = vector.broadcast %cst_30 : f32 to vector<4x1xf32>
      %37 = arith.mulf %35, %36 : vector<4x1xf32>
      %38 = arith.mulf %32, %32 : vector<4x1xf32>
      %39 = arith.subf %37, %38 : vector<4x1xf32>
      %cst_31 = arith.constant 0.000000e+00 : f32
      %40 = vector.broadcast %cst_31 : f32 to vector<4x1xf32>
      %41 = arith.maximumf %39, %40 : vector<4x1xf32>
      %cst_32 = arith.constant 9.99999974E-6 : f32
      %42 = vector.broadcast %cst_32 : f32 to vector<4x1xf32>
      %43 = arith.addf %41, %42 : vector<4x1xf32>
      %44 = math.rsqrt %43 : vector<4x1xf32>
      %c0_33 = arith.constant 0 : index
      %c0_34 = arith.constant 0 : index
      %45 = vector.load %arg4[%c0_33, %c0_34] : memref<4x1xf32, #tpu.memory_space<vmem>>, vector<4x1xf32>
      %46 = arith.mulf %45, %44 : vector<4x1xf32>
      %c0_35 = arith.constant 0 : index
      %c0_36 = arith.constant 0 : index
      %47 = vector.load %arg6[%c0_35, %c0_36] : memref<4x1xf32, #tpu.memory_space<vmem>>, vector<4x1xf32>
      tpu.vector_store %arg6[%c0_35, %c0_36], %46 {strides = array<i32>} : memref<4x1xf32, #tpu.memory_space<vmem>>, vector<4x1xf32>,
      %c0_37 = arith.constant 0 : index
      %c0_38 = arith.constant 0 : index
      %48 = vector.load %arg5[%c0_37, %c0_38] : memref<4x1xf32, #tpu.memory_space<vmem>>, vector<4x1xf32>
      %49 = arith.mulf %32, %46 : vector<4x1xf32>
      %50 = arith.subf %48, %49 : vector<4x1xf32>
      %c0_39 = arith.constant 0 : index
      %c0_40 = arith.constant 0 : index
      %51 = vector.load %arg7[%c0_39, %c0_40] : memref<4x1xf32, #tpu.memory_space<vmem>>, vector<4x1xf32>
      tpu.vector_store %arg7[%c0_39, %c0_40], %50 {strides = array<i32>} : memref<4x1xf32, #tpu.memory_space<vmem>>, vector<4x1xf32>,
    } else {
    }
    return
  }
  func.func @transform_0(%arg0: i32, %arg1: i32, %arg2: i32) -> (i32, i32, i32) {
    %c0_i32 = arith.constant 0 : i32
    return %arg1, %arg0, %arg2 : i32, i32, i32
  }
  func.func @transform_1(%arg0: i32, %arg1: i32, %arg2: i32) -> (i32, i32) {
    %c0_i32 = arith.constant 0 : i32
    %c0_i32_0 = arith.constant 0 : i32
    return %arg0, %c0_i32 : i32, i32
  }
  func.func @transform_2(%arg0: i32, %arg1: i32, %arg2: i32) -> (i32, i32) {
    %c0_i32 = arith.constant 0 : i32
    %c0_i32_0 = arith.constant 0 : i32
    return %arg0, %c0_i32 : i32, i32
  }
  func.func @transform_3(%arg0: i32, %arg1: i32, %arg2: i32) -> (i32, i32) {
    %c0_i32 = arith.constant 0 : i32
    %c0_i32_0 = arith.constant 0 : i32
    return %arg0, %c0_i32 : i32, i32
  }
  func.func @transform_4(%arg0: i32, %arg1: i32, %arg2: i32) -> (i32, i32) {
    %c0_i32 = arith.constant 0 : i32
    %c0_i32_0 = arith.constant 0 : i32
    return %arg0, %c0_i32 : i32, i32
  }
}

</mosaic_0001>

<bundles_post_ra>
// kernel: tpu_custom_call.1
= control target key start
LH: loop header
LB: loop body
LE: loop exit
PB: predicated region body
PF: predicated region fallthrough
CT: control target
= control target key end

     0   :  { %10 = vsyncpa [#allocation5], 0  ;;  %s796_s0 = inlined_call_operand.hbm [shape: f32[2,4,256], index: 0, kind: input, shape index: {}]   ;;  %s797_s1 = inlined_call_operand.vmem [shape: f32[4,1], index: 1, kind: input, shape index: {}]   ;;  %s798_s2 = inlined_call_operand.vmem [shape: f32[4,1], index: 2, kind: input, shape index: {}]   ;;  %s799_s3 = inlined_call_operand.vmem [shape: f32[4,1], index: 3, kind: output, shape index: {0}]   ;;  %s800_s4 = inlined_call_operand.vmem [shape: f32[4,1], index: 4, kind: output, shape index: {1}]  }
   0x1   :  { %12 = vsyncpa [#allocation5 + $0x1], 0  ;;  %s662_s15 = smov 0   ;;  %s664_s16 = smov 0  }
   0x2   :  { %s666_s17 = smov 0   ;;  %s668_s18 = smov 0  }
   0x3   :  { %s670_s19 = smov 0   ;;  %s672_s20 = smov 0  }
   0x4 LB: > { %s476_s21 = sadd.s32 4294967295, %s633_s20   ;;  %s33_s22 = sadd.s32 1, %s629_s19  ;;  %s633_s20 = sphi %s672_s20, %s18_s20   ;;  %s629_s19 = sphi %s670_s19, %s810_s19   ;;  %s625_s18 = sphi %s668_s18, %s809_s18   ;;  %s621_s17 = sphi %s666_s17, %s808_s17   ;;  %s617_s16 = sphi %s664_s16, %s807_s16   ;;  %s613_s15 = sphi %s662_s15, %s806_s15  }
   0x5   : > { %p35_p0 = scmp.ge.s32.totalorder %s33_s22, 2  ;;  %s48_s23 = sadd.s32 1, %s621_s17 }
   0x6   : > { %p55_p1 = scmp.ne.s32.totalorder %s621_s17, %s617_s16  ;;  %p56_p2 = scmp.eq.s32.totalorder %s633_s20, 0 }
   0x7   : > { %s812_s22 = smov (%p35_p0, %s33_s22), 0  ;;  %p61_p4 = scmp.ne.s32.totalorder %s617_s16, %s613_s15 }
   0x8   : > { %p698_p3 = por %p56_p2, %p55_p1  ;;  %s41_s25 = ssub.s32 %s629_s19, %s812_s22 }
   0x9   : > { %p62_p5 = scmp.eq.s32.totalorder %s476_s21, 0  ;;  %p46_p6 = scmp.eq.s32.totalorder %s41_s25, 0 }
   0xa   : > { %p501_p8 = scmp.lt.s32.totalorder %s633_s20, 2  ;;  %s203_s28 = sand.u32 1, %s621_s17  }
   0xb   : > { %p705_p7 = por %p62_p5, %p61_p4  ;;  %s492_s29 = sshll.u32 %s629_s19, 7 }
   0xc   : > { %s711_s27 = scalar_select %p46_p6, %s621_s17, %s48_s23  }
   0xd   : > { %s481_s30 = sshll.u32 %s203_s28, 3  ;;  %s718_s7 = scalar_lea.hbm %s796_s0, %s492_s29 }
   0xe   : > { %s207_s8 = scalar_lea.vmem [#allocation4], %s481_s30  ;;  %p722_p9 = pnand %p501_p8, %p698_p3 }
   0xf   : > { %s219_s9 = sshll.u32 %s207_s8, 4  ;;  %s204_s11 = scalar_lea.sflag [#allocation5], %s203_s28  ;;  %s726_s9 = int_to_ptr.vmem [resolvable:$true] %s219_s9 }
  0x10   : > { %s553_s12 = scalar_lea.hbm %s718_s7, 128  ;;  %p555_p13 = pneg %p722_p9 }
  0x11   : > { %p554_p12 = scmp.ne.s32.totalorder %s718_s7, %s553_s12  ;;  %s558_s15 = scalar_lea.hbm %s796_s0, 256 }
  0x12   : > { %p559_p2 = scmp.lt.u32.totalorder %s718_s7, %s796_s0  ;;  %p560_p3 = scmp.lt.u32.totalorder %s558_s15, %s553_s12 }
  0x13   : > { %p556_p0 = pnand %p555_p13, %p554_p12  ;;  %p562_p5 = scmp.lt.u32.totalorder %s553_s12, %s718_s7 }
  0x14   : > { %p561_p4 = por %p560_p3, %p559_p2 }
  0x15   : > { %p557_p1 = pneg %p556_p0 }
  0x16   : > { %p563_p6 = por %p562_p5, %p561_p4 }
  0x18   : > { %p564_p8 = pnand %p563_p6, %p557_p1 }
  0x1a   : > { %567 = shalt.err (!%p564_p8)
}
  0x1b   : > { %s568_s24 = scalar_lea.vmem %s726_s9, 128  ;;  %s635_s25 = smov [#allocation4]  }
  0x1c   : > { %p569_p12 = scmp.ne.s32.totalorder %s726_s9, %s568_s24  ;;  %s573_s28 = sshll.u32 %s635_s25, 4  ;;  %s574_s28 = int_to_ptr.vmem [resolvable:$false] %s573_s28 }
  0x1d   : > { %s575_s29 = scalar_lea.vmem %s574_s28, 256  ;;  %p576_p11 = scmp.lt.s32.totalorder %s726_s9, %s574_s28 }
  0x1e   : > { %p571_p0 = pnand %p569_p12, %p555_p13  ;;  %p577_p2 = scmp.lt.s32.totalorder %s575_s29, %s568_s24 }
  0x20   : > { %p572_p10 = pneg %p571_p0  ;;  %p578_p3 = por %p577_p2, %p576_p11 }
  0x22   : > { %p579_p4 = pnand %p578_p3, %p572_p10 }
  0x24   : > { %582 = shalt.err (!%p579_p4)
}
  0x25   : > { %500 = dma.hbm_to_vmem [thread:$0]  (!%p722_p9), %s718_s7, 128, %s726_s9, %s204_s11  }
  0x26   : > { %p804_p1 = scmp.lt.s32.totalorder %s633_s20, 3  ;;  %p805_p5 = scmp.ge.s32.totalorder %s633_s20, 1 }
  0x28   : > { %p225_p13 = pnand %p805_p5, %p804_p1 }
  0x29   : > { %s230_s30 = sand.u32 (!%p225_p13), 1, %s617_s16  }
  0x2a   : > { %228 = sbr.rel (%p225_p13) target bundleno = 253 (0xfd), region = 32  ;;  %s485_s5 = sshll.u32 (!%p225_p13), %s230_s30, 3 }
  0x2b   : > { %s231_s6 = scalar_lea.sflag (!%p225_p13), [#allocation5], %s230_s30  ;;  %s234_s8 = scalar_lea.vmem (!%p225_p13), [#allocation4], %s485_s5 }
  0x31   : > { %608 = dma.done.wait (%p705_p7), %s231_s6, 128  }
  0x32   : > { %610 = vsyncadd (%p705_p7), %s231_s6, 4294967168  ;;  %p287_p10 = scmp.eq.s32.totalorder %s625_s18, 0 }
  0x33   : > { %v636_v0 = vmov (%p287_p10), 0.0  }
  0x34   : > { %292 = sbr.rel (!%p287_p10) target bundleno = 59 (0x3b), region = 40  ;;  %293 = vst [vmem:[#allocation2] sm:$0xf] (%p287_p10), %v636_v0  ;;  %294 = vst [vmem:[#allocation3] sm:$0xf] (%p287_p10), %v636_v0 }
  0x3b PF: > { %v295_v1 = vld [vmem:[%s234_s8] sm:$0xf]  ;;  %v296_v2 = vld [vmem:[#allocation2] sm:$0xf]  ;;  %v299_v3 = vld [vmem:[#allocation3] sm:$0xf] }
  0x3c   : > { %v297_v4 = vadd.f32 %v296_v2, %v295_v1  ;;  %v300_v5 = vmul.f32 %v295_v1, %v295_v1  ;;  %p311_p9 = scmp.eq.s32.totalorder %s625_s18, 1  ;;  %v303_v7 = vld [vmem:[%s234_s8 + $0x4] sm:$0xf] }
  0x3d   : > { %v308_v8 = vmul.f32 %v303_v7, %v303_v7  ;;  %vm317_vm0 = vcmask (%p311_p9), 1043456   ;;  %v332_v25 = vld [vmem:[%s797_s1] sm:$0xf] (%p311_p9)  ;;  %vm334_vm1 = vcmask (%p311_p9), 3072  }
  0x3e   : > { %298 = vst [vmem:[#allocation2] sm:$0xf] %v297_v4  ;;  %v301_v6 = vadd.f32 %v300_v5, %v299_v3  ;;  %v336_v28 = vld [vmem:[%s798_s2] sm:$0xf] (%p311_p9) }
  0x40   : > { %302 = vst [vmem:[#allocation3] sm:$0xf] %v301_v6 }
  0x44   : > { %315 = sbr.rel (!%p311_p9) target bundleno = 253 (0xfd), region = 44 }
  0x45   : > { %v304_v9 = vld [vmem:[#allocation2] sm:$0xf] }
  0x46   : > { %v305_v10 = vadd.f32 %v304_v9, %v303_v7 }
  0x47   : > { %v307_v11 = vld [vmem:[#allocation3] sm:$0xf] }
  0x48   : > { %306 = vst [vmem:[#allocation2] sm:$0xf] %v305_v10  ;;  %v309_v12 = vadd.f32 %v308_v8, %v307_v11 }
  0x4a   : > { %310 = vst [vmem:[#allocation3] sm:$0xf] %v309_v12 }
  0x4f   : > { %v316_v13 = vld [vmem:[#allocation2] sm:$0xf] }
  0x50   : > { %v318_v15 = vsel %vm317_vm0, %v316_v13, 0.0 }
  0x51   : > { %v322_v14 = vld [vmem:[#allocation3] sm:$0xf]  ;;  %319 = vadd.xlane.f32.xlu0 %v318_v15 }
  0x52   : > { %v323_v16 = vsel %vm317_vm0, %v322_v14, 0.0 }
  0x55   : > { %324 = vadd.xlane.f32.xlu0 %v323_v16 }
  0xde   : > { %v320_v17 = vpop.xlane.xlu0 %319 }
  0xdf   : > { %v321_v18 = vmul.f32 0.001953125, %v320_v17 }
  0xe1   : > { %v327_v20 = vmul.f32 %v321_v18, %v321_v18 }
  0xe2   : > { %v325_v19 = vpop.xlane.xlu0 %324 }
  0xe3   : > { %v326_v21 = vmul.f32 0.001953125, %v325_v19 }
  0xe5   : > { %v328_v22 = vsub.f32 %v326_v21, %v327_v20 }
  0xe7   : > { %v329_v23 = vmax.f32 %v328_v22, 0.0 }
  0xe9   : > { %v330_v24 = vadd.f32 1e-05, %v329_v23 }
  0xeb   : > { %551 = vrsqrt.f32 %v330_v24 }
  0xf5   : > { %v552_v26 = vpop.eup %551 }
  0xf6   : > { %v333_v27 = vmul.f32 %v552_v26, %v332_v25 }
  0xf8   : > { %335 = vst.msk [vmem:[%s799_s3] sm:$0xf] %vm334_vm1, %v333_v27  ;;  %v337_v29 = vmul.f32 %v333_v27, %v321_v18 }
  0xfa   : > { %v338_v30 = vsub.f32 %v336_v28, %v337_v29 }
  0xfc   : > { %339 = vst.msk [vmem:[%s800_s4] sm:$0xf] %vm334_vm1, %v338_v30 }
  0xfd PF: > { %s18_s20 = sadd.s32 1, %s633_s20   ;;  %s806_s15 = smov %s617_s16 }
  0xfe   : > { %p15_p7 = scmp.ge.s32.totalorder %s18_s20, 4   ;;  %s807_s16 = smov %s621_s17 }
  0xff   : > { %s808_s17 = smov %s711_s27  ;;  %s809_s18 = smov %s629_s19 }
 0x100   : > { %s810_s19 = smov %s812_s22  ;;  %17 = sbr.rel (!%p15_p7) target bundleno = 4 (0x4), region = 98 }
 0x107   :  { %373 = vsyncpa [#allocation5], 1 }
 0x108   :  { %375 = vsyncpa [#allocation5 + $0x1], 1 }

</bundles_post_ra>
